<compile_context>
chip_gen: v5e
topology: v5e:2x2
jax: 0.10.0
libtpu: 0.0.40
codegen_flags: <defaults>
</compile_context>

<pallas_src>
import jax
import jax.numpy as jnp
from jax.experimental import pallas as pl
from jax.experimental.pallas import tpu as pltpu


def _implicit_complement_kernel(x_ref, o_ref):
    # x_ref: (1, C, TILE_ROWS, 128) dense tile in VMEM; o_ref: (1, 1, TILE_ROWS, 128)
    x = x_ref[...]
    if x.dtype != jnp.float32:
        # Upcast sub-32-bit inputs; mandatory on v5e (no bf16 VPU/EUP).
        # TODO(synk): on v7x, bf16 exp with f32 accumulation would keep the EUP
        # off the critical path for bf16 inputs at 3.2 TB/s HBM.
        x = x.astype(jnp.float32)
    den = 1.0 + jnp.sum(jnp.exp(x), axis=1, keepdims=True)      # (1, 1, TILE_ROWS, 128)
    # Exact divide kept (approx reciprocal does not reliably hold 1e-6); the
    # kernel is HBM-bandwidth-bound so this is off the critical path.
    o_ref[...] = (1.0 / den).astype(o_ref.dtype)


def _vmem_budget_and_limit():
    # Generation-aware VMEM sizing: 128 MiB physical on v5e/v6e, 64 MiB on v7x.
    try:
        cap = int(pltpu.get_tpu_info().vmem_capacity_bytes)
    except Exception:  # info unavailable -> assume the tightest generation (v7x)
        cap = 64 * 1024 * 1024
    budget = min(cap // 4, 16 * 1024 * 1024)   # per-step pipelined block budget
    limit = min(cap // 2, 64 * 1024 * 1024)    # scoped VMEM limit with headroom
    return budget, limit


def _choose_tile_rows(B, C, rows_total, in_itemsize, out_itemsize, sub_mult,
                      vmem_budget_bytes):
    # Honest per-step VMEM footprint for the 4-D sublane-dense layout:
    #   input  (double-buffered): 2 * C * TILE_ROWS * 128 * in_itemsize
    #   output (double-buffered): 2 * 1 * TILE_ROWS * 128 * out_itemsize
    bytes_per_row = 2 * 128 * (C * in_itemsize + out_itemsize)
    tile = vmem_budget_bytes // bytes_per_row
    # Cap at ~128K lanes per step: MiB-scale DMA already amortizes per-step overhead.
    tile = min(tile, 1024)
    # Keep enough grid steps for v7x megacore (2 TensorCores): aim for >= 8 total.
    want_tiles = max(1, pl.cdiv(8, max(B, 1)))
    if rows_total >= want_tiles * sub_mult:
        tile = min(tile, rows_total // want_tiles)
    if tile >= rows_total:
        return rows_total          # full-extent block along rows (always legal)
    return max(sub_mult, (tile // sub_mult) * sub_mult)


def implicit_complement(x):
    """x: (B, C, H, W) -> (B, 1, H, W); out = 1 / (1 + exp(x).sum(dim=1, keepdim=True))."""
    B, C, H, W = x.shape
    HW = H * W
    in_itemsize = jnp.dtype(x.dtype).itemsize
    out_itemsize = in_itemsize

    # Sublane-dense view (B, C, ROWS, 128). Pad only to the minimal 128-lane
    # multiple (no pad / no copy at all when HW % 128 == 0).
    hw_pad = pl.cdiv(HW, 128) * 128
    rows_total = hw_pad // 128

    x3 = x.reshape(B, C, HW)
    if hw_pad != HW:
        x3 = jnp.pad(x3, ((0, 0), (0, 0), (0, hw_pad - HW)))
    x4 = x3.reshape(B, C, rows_total, 128)

    # Dense sublane packing: 8 rows for f32, 16 for bf16, 32 for int8/fp8.
    sub_mult = max(8, 32 // in_itemsize)
    vmem_budget, vmem_limit = _vmem_budget_and_limit()
    tile_rows = _choose_tile_rows(B, C, rows_total, in_itemsize, out_itemsize,
                                  sub_mult, vmem_budget)
    num_row_tiles = pl.cdiv(rows_total, tile_rows)

    # TODO(synk): for small-HW / large-B shapes, additionally block over batch
    # ((TILE_B, C, ROWS, 128)) to keep per-step traffic at MiB scale.
    out4 = pl.pallas_call(
        _implicit_complement_kernel,
        out_shape=jax.ShapeDtypeStruct((B, 1, rows_total, 128), x.dtype),
        grid_spec=pltpu.PrefetchScalarGridSpec(
            num_scalar_prefetch=0,
            grid=(B, num_row_tiles),
            in_specs=[pl.BlockSpec((1, C, tile_rows, 128),
                                   lambda b, t: (b, 0, t, 0))],
            out_specs=pl.BlockSpec((1, 1, tile_rows, 128),
                                   lambda b, t: (b, 0, t, 0)),
        ),
        compiler_params=pltpu.CompilerParams(
            dimension_semantics=("parallel", "parallel"),
            vmem_limit_bytes=vmem_limit,
        ),
    )(x4)

    out = out4.reshape(B, 1, hw_pad)
    if hw_pad != HW:
        out = out[:, :, :HW]        # output is C-times smaller than input: cheap
    return out.reshape(B, 1, H, W)


def implicit_complement_ref(x):
    return 1.0 / (1.0 + jnp.exp(x).sum(axis=1, keepdims=True))


if __name__ == "__main__":
    key = jax.random.PRNGKey(0)
    x = jax.random.normal(key, (2, 4, 16, 16), dtype=jnp.float32)

    out = implicit_complement(x)
    jax.block_until_ready(out)

    ref = implicit_complement_ref(x)
    assert out.shape == (2, 1, 16, 16), out.shape
    assert jnp.allclose(out, ref, atol=1e-6, rtol=1e-6), "mismatch vs reference"

    # Non-128-multiple spatial size: exercises the minimal 128-pad path.
    x2 = jax.random.normal(jax.random.PRNGKey(1), (2, 4, 10, 10), dtype=jnp.float32)
    out2 = implicit_complement(x2)
    jax.block_until_ready(out2)
    assert out2.shape == (2, 1, 10, 10), out2.shape
    assert jnp.allclose(out2, implicit_complement_ref(x2), atol=1e-6, rtol=1e-6), \
        "mismatch vs reference (ragged spatial)"

    print("KERNEL_OK")
</pallas_src>

<mosaic_0001>
module attributes {stable_mosaic.version = 11 : i64} {
  func.func @_implicit_complement_kernel(%arg0: i32, %arg1: i32, %arg2: memref<1x4x2x128xf32, #tpu.memory_space<vmem>>, %arg3: memref<1x1x2x128xf32, #tpu.memory_space<vmem>>) attributes {dimension_semantics = [#tpu.dimension_semantics<parallel>, #tpu.dimension_semantics<parallel>], iteration_bounds = array<i64: 2, 1>, scalar_prefetch = 0 : i64, scratch_operands = 0 : i64, tpu.core_type = #tpu.core_type<tc>, window_params = [{transform_indices = @transform_0, window_bounds = array<i64: 1, 4, 2, 128>}, {transform_indices = @transform_1, window_bounds = array<i64: 1, 1, 2, 128>}]} {
    %c0 = arith.constant 0 : index
    %c0_0 = arith.constant 0 : index
    %c0_1 = arith.constant 0 : index
    %c0_2 = arith.constant 0 : index
    %0 = vector.load %arg2[%c0, %c0_0, %c0_1, %c0_2] : memref<1x4x2x128xf32, #tpu.memory_space<vmem>>, vector<1x4x2x128xf32>
    %1 = math.exp %0 : vector<1x4x2x128xf32>
    %cst = arith.constant dense<0.000000e+00> : vector<1x2x128xf32>
    %2 = vector.multi_reduction <add>, %1, %cst [1] : vector<1x4x2x128xf32> to vector<1x2x128xf32>
    %3 = vector.shape_cast %2 : vector<1x2x128xf32> to vector<1x1x2x128xf32>
    %cst_3 = arith.constant 1.000000e+00 : f32
    %4 = vector.broadcast %cst_3 : f32 to vector<1x1x2x128xf32>
    %5 = arith.addf %4, %3 : vector<1x1x2x128xf32>
    %cst_4 = arith.constant 1.000000e+00 : f32
    %6 = vector.broadcast %cst_4 : f32 to vector<1x1x2x128xf32>
    %7 = arith.divf %6, %5 : vector<1x1x2x128xf32>
    %c0_5 = arith.constant 0 : index
    %c0_6 = arith.constant 0 : index
    %c0_7 = arith.constant 0 : index
    %c0_8 = arith.constant 0 : index
    %8 = vector.load %arg3[%c0_5, %c0_6, %c0_7, %c0_8] : memref<1x1x2x128xf32, #tpu.memory_space<vmem>>, vector<1x1x2x128xf32>
    tpu.vector_store %arg3[%c0_5, %c0_6, %c0_7, %c0_8], %7 {strides = array<i32>} : memref<1x1x2x128xf32, #tpu.memory_space<vmem>>, vector<1x1x2x128xf32>,
    return
  }
  func.func @transform_0(%arg0: i32, %arg1: i32) -> (i32, i32, i32, i32) {
    %c0_i32 = arith.constant 0 : i32
    %c0_i32_0 = arith.constant 0 : i32
    %c0_i32_1 = arith.constant 0 : i32
    return %arg0, %c0_i32, %arg1, %c0_i32_0 : i32, i32, i32, i32
  }
  func.func @transform_1(%arg0: i32, %arg1: i32) -> (i32, i32, i32, i32) {
    %c0_i32 = arith.constant 0 : i32
    %c0_i32_0 = arith.constant 0 : i32
    %c0_i32_1 = arith.constant 0 : i32
    return %arg0, %c0_i32, %arg1, %c0_i32_0 : i32, i32, i32, i32
  }
}

</mosaic_0001>

<bundles_post_ra>
// kernel: tpu_custom_call.1
= control target key start
LH: loop header
LB: loop body
LE: loop exit
PB: predicated region body
PF: predicated region fallthrough
CT: control target
= control target key end

     0   :  { %6 = vsyncpa [#allocation3], 0  ;;  %s625_s0 = inlined_call_operand.hbm [shape: f32[2,4,2,128], index: 0, kind: input, shape index: {}]   ;;  %s626_s1 = inlined_call_operand.hbm [shape: f32[2,1,2,128], index: 1, kind: output, shape index: {}]  }
   0x1   :  { %8 = vsyncpa [#allocation3 + $0x1], 0 }
   0x2   :  { %9 = vsyncpa [#allocation4], 0 }
   0x3   :  { %11 = vsyncpa [#allocation4 + $0x1], 0  ;;  %s504_s6 = smov 0   ;;  %s506_s7 = smov 0  }
   0x4   :  { %s508_s8 = smov 0   ;;  %s510_s9 = smov 0  }
   0x5   :  { %s512_s10 = smov 0   ;;  %s514_s11 = smov 0  }
   0x6 LB: > { %s289_s12 = sadd.s32 4294967295, %s490_s11   ;;  %s290_s13 = sadd.s32 4294967294, %s490_s11   ;;  %s490_s11 = sphi %s514_s11, %s17_s11   ;;  %s486_s10 = sphi %s512_s10, %s635_s10   ;;  %s482_s9 = sphi %s510_s9, %s634_s9   ;;  %s478_s8 = sphi %s508_s8, %s633_s8   ;;  %s474_s7 = sphi %s506_s7, %s632_s7   ;;  %s470_s6 = sphi %s504_s6, %s631_s6  }
   0x7   : > { %s29_s14 = sadd.s32 1, %s486_s10  ;;  %s38_s15 = sadd.s32 1, %s478_s8 }
   0x8   : > { %p31_p0 = scmp.ge.s32.totalorder %s29_s14, 2  ;;  %p45_p1 = scmp.ne.s32.totalorder %s478_s8, %s474_s7 }
   0x9   : > { %p46_p2 = scmp.eq.s32.totalorder %s490_s11, 0  ;;  %p51_p3 = scmp.ne.s32.totalorder %s474_s7, %s470_s6 }
   0xa   : > { %s637_s14 = smov (%p31_p0, %s29_s14), 0  ;;  %p52_p5 = scmp.eq.s32.totalorder %s289_s12, 0 }
   0xb   : > { %p545_p4 = por %p46_p2, %p45_p1  ;;  %s33_s17 = ssub.s32 %s486_s10, %s637_s14 }
   0xc   : > { %p77_p6 = scmp.eq.s32.totalorder %s289_s12, 1  ;;  %p36_p7 = scmp.eq.s32.totalorder %s33_s17, 0 }
   0xd   : > { %p551_p8 = por %p52_p5, %p51_p3  ;;  %p83_p10 = scmp.eq.s32.totalorder %s290_s13, 1 }
   0xe   : > { %p555_p9 = por %p77_p6, %p45_p1  ;;  %p292_p12 = scmp.ge.s32.totalorder %s490_s11, 2 }
   0xf   : > { %s560_s20 = scalar_select %p36_p7, %s478_s8, %s38_s15  }
  0x10   : > { %p562_p11 = por %p83_p10, %p51_p3  ;;  %p316_p13 = scmp.lt.s32.totalorder %s490_s11, 2 }
  0x11   : > { %s103_s22 = sand.u32 1, %s478_s8   ;;  %s303_s24 = sshll.u32 %s486_s10, 3 }
  0x12   : > { %s293_s23 = sshll.u32 %s103_s22, 3  ;;  %s113_s27 = scalar_lea.hbm %s625_s0, %s303_s24 }
  0x13   : > { %s107_s28 = scalar_lea.vmem [#allocation2], %s293_s23  ;;  %s114_s30 = sshll.u32 %s113_s27, 4  ;;  %s115_s30 = int_to_ptr.hbm [resolvable:$true] %s114_s30 }
  0x14   : > { %s116_s29 = sshll.u32 %s107_s28, 4  ;;  %p309_p0 = pnand %p316_p13, %p545_p4  ;;  %s117_s29 = int_to_ptr.vmem [resolvable:$true] %s116_s29 }
  0x15   : > { %p296_p1 = scmp.ge.s32.totalorder %s490_s11, 1  ;;  %s104_s2 = scalar_lea.sflag [#allocation3], %s103_s22 }
  0x16   : > { %s492_s3 = smov 32   ;;  %s493_s4 = smov 2  }
  0x17   : > { %311 = dma.hbm_to_vmem [thread:$0]  (!%p309_p0), %s115_s30, 128, %s117_s29, %s104_s2, %s492_s3, %s492_s3, %s493_s4  }
  0x18   : > { %p124_p2 = scmp.lt.s32.totalorder %s490_s11, 3 }
  0x1a   : > { %p125_p3 = pnand %p296_p1, %p124_p2 }
  0x1b   : > { %s578_s5 = sand.u32 (!%p125_p3), 1, %s474_s7  }
  0x1c   : > { %128 = sbr.rel (%p125_p3) target bundleno = 74 (0x4a), region = 24  ;;  %s297_s12 = sshll.u32 (!%p125_p3), %s578_s5, 3 }
  0x1d   : > { %s131_s13 = scalar_lea.sflag (!%p125_p3), [#allocation3], %s578_s5  ;;  %s134_s15 = scalar_lea.vmem (!%p125_p3), [#allocation2], %s297_s12 }
  0x21   : > { %461 = dma.done.wait (%p551_p8), %s131_s13, 128  }
  0x22   : > { %463 = vsyncadd (%p551_p8), %s131_s13, 4294967168  ;;  %v154_v0 = vld [vmem:[%s134_s15] sm:$0x3]  ;;  %v155_v1 = vld [vmem:[%s134_s15 + $0x2] sm:$0x3]  ;;  %vm166_vm0 = vcmask 1041408  }
  0x23   : > { %v156_v2 = vld [vmem:[%s134_s15 + $0x4] sm:$0x3]  ;;  %v157_v3 = vld [vmem:[%s134_s15 + $0x6] sm:$0x3]  ;;  %v158_v4 = vmul.f32 1.442695, %v154_v0 }
  0x24   : > { %v160_v5 = vmul.f32 1.442695, %v155_v1  ;;  %v162_v6 = vmul.f32 1.442695, %v156_v2  ;;  %v164_v7 = vmul.f32 1.442695, %v157_v3 }
  0x25   : > { %368 = vpow2.f32 %v158_v4  ;;  %s298_s16 = sshll.u32 %s578_s5, 1  ;;  %s300_s17 = sshll.u32 %s482_s9, 1 }
  0x26   : > { %370 = vpow2.f32 %v160_v5  ;;  %s203_s23 = scalar_lea.hbm %s626_s1, %s300_s17  ;;  %s153_s24 = scalar_lea.vmem [#allocation5], %s298_s16 }
  0x27   : > { %372 = vpow2.f32 %v162_v6  ;;  %s205_s25 = sshll.u32 %s153_s24, 4  ;;  %s207_s26 = sshll.u32 %s203_s23, 4  ;;  %s206_s25 = int_to_ptr.vmem [resolvable:$true] %s205_s25  ;;  %s208_s26 = int_to_ptr.hbm [resolvable:$true] %s207_s26 }
  0x28   : > { %374 = vpow2.f32 %v164_v7  ;;  %s192_s9 = scalar_lea.sflag [#allocation4], %s578_s5  ;;  %s422_s27 = sshra.s32 %s208_s26, 4  ;;  %s423_s27 = int_to_ptr.hbm [resolvable:$true] %s422_s27 }
  0x29   : > { %s424_s28 = scalar_lea.hbm %s423_s27, 2  ;;  %s428_s2 = scalar_lea.hbm %s626_s1, 4 }
  0x2a   : > { %p425_p4 = scmp.ne.s32.totalorder %s423_s27, %s424_s28  ;;  %p429_p7 = scmp.lt.s32.totalorder %s423_s27, %s626_s1 }
  0x2b   : > { %v369_v8 = vpop.eup %368  ;;  %p430_p8 = scmp.lt.s32.totalorder %s428_s2, %s424_s28 }
  0x2c   : > { %v371_v9 = vpop.eup %370  ;;  %v167_v10 = vsel %vm166_vm0, %v369_v8, 0.0  ;;  %p426_p5 = pnand %p425_p4, %p555_p9 }
  0x2d   : > { %v373_v11 = vpop.eup %372  ;;  %v168_v12 = vsel %vm166_vm0, %v371_v9, 0.0  ;;  %p431_p10 = por %p430_p8, %p429_p7 }
  0x2e   : > { %v375_v13 = vpop.eup %374  ;;  %v169_v14 = vadd.f32 %v168_v12, %v167_v10  ;;  %v170_v15 = vsel %vm166_vm0, %v373_v11, 0.0  ;;  %p427_p6 = pneg %p426_p5 }
  0x2f   : > { %v172_v16 = vsel %vm166_vm0, %v375_v13, 0.0 }
  0x30   : > { %v171_v17 = vadd.f32 %v170_v15, %v169_v14  ;;  %p432_p13 = pnand %p431_p10, %p427_p6 }
  0x32   : > { %v173_v18 = vadd.f32 %v172_v16, %v171_v17 }
  0x34   : > { %v174_v19 = vadd.f32 1.0, %v173_v18 }
  0x36   : > { %376 = vrcp.f32 %v174_v19  ;;  %v186_v22 = vand.u32 2147483648, %v174_v19  ;;  %vm180_vm1 = vweird.f32 %v174_v19  ;;  %v184_v24 = vand.u32 2147483647, %v174_v19 }
  0x38   : > { %v187_v26 = vor.u32 1.1754944e-38, %v186_v22  ;;  %vm185_vm4 = vcmp.eq.f32.partialorder %v184_v24, 8.507059e+37 }
  0x3c   : > { %v377_v20 = vpop.eup %376 }
  0x3d   : > { %v176_v21 = vmul.f32 %v377_v20, %v174_v19  ;;  %vm181_vm2 = vweird.f32 %v377_v20 }
  0x3e   : > { %vm182_vm3 = vmor %vm180_vm1, %vm181_vm2 }
  0x3f   : > { %v177_v23 = vsub.f32 1.0, %v176_v21 }
  0x41   : > { %v178_v25 = vmul.f32 %v377_v20, %v177_v23 }
  0x43   : > { %v179_v27 = vadd.f32 %v377_v20, %v178_v25 }
  0x45   : > { %v183_v28 = vsel %vm182_vm3, %v377_v20, %v179_v27 }
  0x46   : > { %v188_v29 = vsel %vm185_vm4, %v187_v26, %v183_v28 }
  0x47   : > { %190 = vst [vmem:[%s153_s24] sm:$0x3] %v188_v29 }
  0x48   : > { %435 = shalt.err (!%p432_p13)
}
  0x49   : > { %306 = dma.vmem_to_hbm [thread:$0]  (%p555_p9), %s206_s25, 32, %s208_s26, %s192_s9  }
  0x4a PF: > { %s219_s5 = sand.u32 1, %s470_s6   ;;  %p313_p0 = pnand %p292_p12, %p562_p11 }
  0x4b   : > { %s220_s12 = scalar_lea.sflag [#allocation4], %s219_s5 }
  0x4c   : > { %p314_p1 = pneg %p313_p0 }
  0x4e   : > { %465 = dma.done.wait (%p314_p1), %s220_s12, 32  }
  0x4f   : > { %467 = vsyncadd (%p314_p1), %s220_s12, 4294967264  ;;  %s17_s11 = sadd.s32 1, %s490_s11   ;;  %s631_s6 = smov %s474_s7 }
  0x50   : > { %p14_p2 = scmp.ge.s32.totalorder %s17_s11, 4   ;;  %s632_s7 = smov %s478_s8 }
  0x51   : > { %s633_s8 = smov %s560_s20  ;;  %s634_s9 = smov %s486_s10 }
  0x52   : > { %s635_s10 = smov %s637_s14  ;;  %16 = sbr.rel (!%p14_p2) target bundleno = 6 (0x6), region = 69 }
  0x57   :  { %226 = vsyncpa [#allocation3], 1 }
  0x58   :  { %228 = vsyncpa [#allocation3 + $0x1], 1 }
  0x59   :  { %229 = vsyncpa [#allocation4], 1 }
  0x5a   :  { %231 = vsyncpa [#allocation4 + $0x1], 1 }

</bundles_post_ra>
